<compile_context>
chip_gen: v6e
topology: v6e:2x2x1
jax: 0.10.0
libtpu: 0.0.40
codegen_flags: <defaults>
</compile_context>

<pallas_src>
import functools

import jax
import jax.numpy as jnp
import numpy as np
from jax.experimental import pallas as pl
from jax.experimental.pallas import tpu as pltpu

NUM_HEADS = 4
NUM_MODALITIES = 3   # MultiModalClassifier_2.forward(X1, X2, X3)


def _dgsam_kernel(xs_ref,
                  w_q_ref, b_q_ref,          # shared Q projection
                  w_vs_ref, b_vs_ref,        # self-attn V projection
                  w_kc_ref, b_kc_ref,        # cross-attn K projection
                  w_vc_ref, b_vc_ref,        # cross-attn V projection
                  w_os_ref, w_oc_ref, b_o_ref,   # out projections (+cls folded)
                  hmask_ref, hmask_t_ref,    # (D, H) / (H, D) head masks
                  out_ref):
    f32 = jnp.float32
    dot = functools.partial(jnp.dot, preferred_element_type=f32)

    xs = xs_ref[...].astype(f32)              # (3, tb, D)
    _, tb, D = xs.shape
    hd = D // NUM_HEADS
    scale = 1.0 / float(np.sqrt(hd))
    n = NUM_MODALITIES * tb

    x1, x2, x3 = xs[0], xs[1], xs[2]
    xq = xs.reshape(n, D)                     # [X1; X2; X3]
    # "Other modality" stacks; key order per query is permuted relative to
    # the reference, but the 2-way softmax + sum over keys is order-invariant.
    oth0 = jnp.concatenate([x2, x3, x1], axis=0)
    oth1 = jnp.concatenate([x3, x1, x2], axis=0)
    dif = jnp.concatenate([xq - oth0, xq - oth1], axis=0)     # (2n, D)

    # Projections kept as separate, lane-clean matmuls (no column-offset
    # slicing: D is not a multiple of 128 at demo size).
    q_proj = dot(xq, w_q_ref[...]) + b_q_ref[...]             # (n, D)
    vs = dot(xq, w_vs_ref[...]) + b_vs_ref[...]               # (n, D)
    kc = dot(dif, w_kc_ref[...]) + b_kc_ref[...]              # (2n, D)
    vc = dot(dif, w_vc_ref[...]) + b_vc_ref[...]              # (2n, D)

    # Per-head scores for the two keys (tile-aligned row slices, no q dup).
    hmask = hmask_ref[...]
    s0 = dot(q_proj * kc[:n], hmask) * scale                  # (n, H)
    s1 = dot(q_proj * kc[n:], hmask) * scale                  # (n, H)

    # Numerically stable 2-way softmax over the key axis.
    m = jnp.maximum(s0, s1)
    e0 = jnp.exp(s0 - m)
    e1 = jnp.exp(s1 - m)
    inv = 1.0 / (e0 + e1)   # exact; pl.reciprocal(approx=True) is an option
    # Single broadcast matmul covering both keys.
    w01 = jnp.concatenate([e0 * inv, e1 * inv], axis=0)       # (2n, H)
    bcast = dot(w01, hmask_t_ref[...])                        # (2n, D)
    wv = bcast * vc
    attn = wv[:n] + wv[n:]                                    # (n, D)

    # self_out + cross_out with the classifier folded into the out-proj
    # weights: columns [0:D] = combined features, [D:D+C] = logits.
    outp = dot(vs, w_os_ref[...]) + dot(attn, w_oc_ref[...]) + b_o_ref[...]
    out_ref[...] = outp.reshape(NUM_MODALITIES, tb, -1).astype(out_ref.dtype)


@jax.jit
def multimodal_classifier(X1, X2, X3, params):
    B, D = X1.shape
    C = params["w_cls"].shape[-1]
    H, hd = NUM_HEADS, D // NUM_HEADS

    # One stacked activation tensor -> a single dense input DMA.
    xs = jnp.stack([X1, X2, X3], axis=0)                      # (3, B, D)

    # Trace-time weight prep: fold the classifier into the out projections.
    w_cls, b_cls = params["w_cls"], params["b_cls"]
    w_os_plus = jnp.concatenate(
        [params["w_o_self"], params["w_o_self"] @ w_cls], axis=1)   # (D, D+C)
    w_oc_plus = jnp.concatenate(
        [params["w_o_cross"], params["w_o_cross"] @ w_cls], axis=1)  # (D, D+C)
    b_o_sum = params["b_o_self"] + params["b_o_cross"]               # (1, D)
    b_o_plus = jnp.concatenate([b_o_sum, b_o_sum @ w_cls + b_cls], axis=1)

    # Block-diagonal head masks (passed as operands; kernels must not capture
    # traced constants).
    head_mask = (jnp.arange(D)[:, None] // hd ==
                 jnp.arange(H)[None, :]).astype(jnp.float32)          # (D, H)
    head_mask_t = head_mask.T                                          # (H, D)

    # Batch tile: stream the batch; weights stay resident.
    tb = B
    for cand in (512, 256, 128, 64, 32, 16, 8):
        if B % cand == 0:
            tb = cand
            break

    args = (xs,
            params["w_q"], params["b_q"],
            params["w_v_self"], params["b_v_self"],
            params["w_k_cross"], params["b_k_cross"],
            params["w_v_cross"], params["b_v_cross"],
            w_os_plus, w_oc_plus, b_o_plus,
            head_mask, head_mask_t)

    def resident_spec(a):
        nd = a.ndim
        return pl.BlockSpec(a.shape, lambda i, _nd=nd: (0,) * _nd)

    in_specs = ([pl.BlockSpec((NUM_MODALITIES, tb, D), lambda i: (0, i, 0))]
                + [resident_spec(a) for a in args[1:]])

    out = pl.pallas_call(
        _dgsam_kernel,
        grid=(B // tb,),
        in_specs=in_specs,
        out_specs=pl.BlockSpec((NUM_MODALITIES, tb, D + C),
                               lambda i: (0, i, 0)),
        out_shape=jax.ShapeDtypeStruct((NUM_MODALITIES, B, D + C),
                                       jnp.float32),
        compiler_params=pltpu.CompilerParams(
            dimension_semantics=("parallel",)),
    )(*args)
    # TODO(synk): for production B*D also set vmem_limit_bytes and shrink tb
    # per generation (v5e 16 MiB scoped default, v7x 64 MiB physical VMEM),
    # and consider bf16 matmul inputs on v6e/v7x.

    diff1 = out[0, :, :D]
    diff2 = out[1, :, :D]
    diff3 = out[2, :, :D]
    logits = out[:, :, D:].reshape(NUM_MODALITIES * B, C)
    return diff1, diff2, diff3, logits


# ---------------- deterministic parameter init -----------------------------
def init_params(key, D, C=3):
    ks = jax.random.split(key, 14)
    w = lambda k, s: (jax.random.normal(k, s, jnp.float32) * 0.05)
    return {
        # shared Q projection (only the cross-attention path depends on it)
        "w_q": w(ks[0], (D, D)), "b_q": w(ks[1], (1, D)),
        # self-attention V / out projection
        "w_v_self": w(ks[2], (D, D)), "b_v_self": w(ks[3], (1, D)),
        "w_o_self": w(ks[4], (D, D)), "b_o_self": w(ks[5], (1, D)),
        # cross-attention K / V / out projection
        "w_k_cross": w(ks[6], (D, D)), "b_k_cross": w(ks[7], (1, D)),
        "w_v_cross": w(ks[8], (D, D)), "b_v_cross": w(ks[9], (1, D)),
        "w_o_cross": w(ks[10], (D, D)), "b_o_cross": w(ks[11], (1, D)),
        # classifier
        "w_cls": w(ks[12], (D, C)), "b_cls": w(ks[13], (1, C)),
    }
    # NOTE: self-attention Q/K projection params are omitted: with a
    # single-token self-attention the softmax is exactly 1 so they cannot
    # affect outputs.


# ---------------- pure-JAX reference (mirrors PyTorch MHA math) -------------
def _attention_ref(q, key_list, p):
    B, D = q.shape
    H, hd = NUM_HEADS, D // NUM_HEADS
    Q = q @ p["w_q"] + p["b_q"]
    Vs = q @ p["w_v_self"] + p["b_v_self"]
    self_out = Vs @ p["w_o_self"] + p["b_o_self"]

    kv = jnp.stack(key_list, axis=1)               # (B, K, D)
    dif = q[:, None, :] - kv                       # (B, K, D)
    K = dif @ p["w_k_cross"] + p["b_k_cross"]
    V = dif @ p["w_v_cross"] + p["b_v_cross"]
    nk = kv.shape[1]
    Qh = Q.reshape(B, 1, H, hd).transpose(0, 2, 1, 3)
    Kh = K.reshape(B, nk, H, hd).transpose(0, 2, 1, 3)
    Vh = V.reshape(B, nk, H, hd).transpose(0, 2, 1, 3)
    sc = jnp.einsum("bhqd,bhkd->bhqk", Qh, Kh) / np.sqrt(hd)
    wts = jax.nn.softmax(sc, axis=-1)
    out = jnp.einsum("bhqk,bhkd->bhqd", wts, Vh)
    out = out.transpose(0, 2, 1, 3).reshape(B, D)
    cross_out = out @ p["w_o_cross"] + p["b_o_cross"]
    return self_out + cross_out


def _reference(X1, X2, X3, p):
    d1 = _attention_ref(X1, [X2, X3], p)
    d2 = _attention_ref(X2, [X1, X3], p)
    d3 = _attention_ref(X3, [X1, X2], p)
    feats = jnp.concatenate([d1, d2, d3], axis=0)
    logits = feats @ p["w_cls"] + p["b_cls"]
    return d1, d2, d3, logits


if __name__ == "__main__":
    B, D, C = 8, 32, 3
    key = jax.random.PRNGKey(0)
    kx = jax.random.split(key, 4)
    X1 = jax.random.normal(kx[0], (B, D), jnp.float32)
    X2 = jax.random.normal(kx[1], (B, D), jnp.float32)
    X3 = jax.random.normal(kx[2], (B, D), jnp.float32)
    params = init_params(kx[3], D, C)

    outs = multimodal_classifier(X1, X2, X3, params)
    outs = jax.block_until_ready(outs)

    refs = _reference(X1, X2, X3, params)
    for o, r in zip(outs, refs):
        np.testing.assert_allclose(np.asarray(o), np.asarray(r),
                                   rtol=1e-4, atol=1e-4)
    print("KERNEL_OK")
</pallas_src>

<mosaic_0001>
module attributes {stable_mosaic.version = 11 : i64} {
  func.func @_dgsam_kernel(%arg0: i32, %arg1: memref<3x8x32xf32, #tpu.memory_space<vmem>>, %arg2: memref<32x32xf32, #tpu.memory_space<vmem>>, %arg3: memref<1x32xf32, #tpu.memory_space<vmem>>, %arg4: memref<32x32xf32, #tpu.memory_space<vmem>>, %arg5: memref<1x32xf32, #tpu.memory_space<vmem>>, %arg6: memref<32x32xf32, #tpu.memory_space<vmem>>, %arg7: memref<1x32xf32, #tpu.memory_space<vmem>>, %arg8: memref<32x32xf32, #tpu.memory_space<vmem>>, %arg9: memref<1x32xf32, #tpu.memory_space<vmem>>, %arg10: memref<32x35xf32, #tpu.memory_space<vmem>>, %arg11: memref<32x35xf32, #tpu.memory_space<vmem>>, %arg12: memref<1x35xf32, #tpu.memory_space<vmem>>, %arg13: memref<32x4xf32, #tpu.memory_space<vmem>>, %arg14: memref<4x32xf32, #tpu.memory_space<vmem>>, %arg15: memref<3x8x35xf32, #tpu.memory_space<vmem>>) attributes {dimension_semantics = [#tpu.dimension_semantics<parallel>], iteration_bounds = array<i64: 1>, scalar_prefetch = 0 : i64, scratch_operands = 0 : i64, tpu.core_type = #tpu.core_type<tc>, window_params = [{transform_indices = @transform_0, window_bounds = array<i64: 3, 8, 32>}, {pipeline_mode = #tpu.pipeline_mode<synchronous>, transform_indices = @transform_1, window_bounds = array<i64: 32, 32>}, {pipeline_mode = #tpu.pipeline_mode<synchronous>, transform_indices = @transform_2, window_bounds = array<i64: 1, 32>}, {pipeline_mode = #tpu.pipeline_mode<synchronous>, transform_indices = @transform_3, window_bounds = array<i64: 32, 32>}, {pipeline_mode = #tpu.pipeline_mode<synchronous>, transform_indices = @transform_4, window_bounds = array<i64: 1, 32>}, {pipeline_mode = #tpu.pipeline_mode<synchronous>, transform_indices = @transform_5, window_bounds = array<i64: 32, 32>}, {pipeline_mode = #tpu.pipeline_mode<synchronous>, transform_indices = @transform_6, window_bounds = array<i64: 1, 32>}, {pipeline_mode = #tpu.pipeline_mode<synchronous>, transform_indices = @transform_7, window_bounds = array<i64: 32, 32>}, {pipeline_mode = #tpu.pipeline_mode<synchronous>, transform_indices = @transform_8, window_bounds = array<i64: 1, 32>}, {pipeline_mode = #tpu.pipeline_mode<synchronous>, transform_indices = @transform_9, window_bounds = array<i64: 32, 35>}, {pipeline_mode = #tpu.pipeline_mode<synchronous>, transform_indices = @transform_10, window_bounds = array<i64: 32, 35>}, {pipeline_mode = #tpu.pipeline_mode<synchronous>, transform_indices = @transform_11, window_bounds = array<i64: 1, 35>}, {pipeline_mode = #tpu.pipeline_mode<synchronous>, transform_indices = @transform_12, window_bounds = array<i64: 32, 4>}, {pipeline_mode = #tpu.pipeline_mode<synchronous>, transform_indices = @transform_13, window_bounds = array<i64: 4, 32>}, {transform_indices = @transform_14, window_bounds = array<i64: 3, 8, 35>}]} {
    %c0 = arith.constant 0 : index
    %c0_0 = arith.constant 0 : index
    %c0_1 = arith.constant 0 : index
    %0 = vector.load %arg1[%c0, %c0_0, %c0_1] : memref<3x8x32xf32, #tpu.memory_space<vmem>>, vector<3x8x32xf32>
    %1 = vector.extract_strided_slice %0 {offsets = [0, 0, 0], sizes = [1, 8, 32], strides = [1, 1, 1]} : vector<3x8x32xf32> to vector<1x8x32xf32>
    %2 = vector.shape_cast %1 : vector<1x8x32xf32> to vector<8x32xf32>
    %3 = vector.extract_strided_slice %0 {offsets = [1, 0, 0], sizes = [1, 8, 32], strides = [1, 1, 1]} : vector<3x8x32xf32> to vector<1x8x32xf32>
    %4 = vector.shape_cast %3 : vector<1x8x32xf32> to vector<8x32xf32>
    %5 = vector.extract_strided_slice %0 {offsets = [2, 0, 0], sizes = [1, 8, 32], strides = [1, 1, 1]} : vector<3x8x32xf32> to vector<1x8x32xf32>
    %6 = vector.shape_cast %5 : vector<1x8x32xf32> to vector<8x32xf32>
    %7 = vector.shape_cast %0 : vector<3x8x32xf32> to vector<24x32xf32>
    %8 = tpu.concatenate %4, %6, %2 in 0 : vector<8x32xf32>, vector<8x32xf32>, vector<8x32xf32> -> vector<24x32xf32>
    %9 = tpu.concatenate %6, %2, %4 in 0 : vector<8x32xf32>, vector<8x32xf32>, vector<8x32xf32> -> vector<24x32xf32>
    %10 = arith.subf %7, %8 : vector<24x32xf32>
    %11 = arith.subf %7, %9 : vector<24x32xf32>
    %12 = tpu.concatenate %10, %11 in 0 : vector<24x32xf32>, vector<24x32xf32> -> vector<48x32xf32>
    %c0_2 = arith.constant 0 : index
    %c0_3 = arith.constant 0 : index
    %13 = vector.load %arg2[%c0_2, %c0_3] : memref<32x32xf32, #tpu.memory_space<vmem>>, vector<32x32xf32>
    %cst = arith.constant dense<0.000000e+00> : vector<24x32xf32>
    %14 = tpu.matmul %7, %13, %cst {dimension_numbers = #tpu.dot_dimension_numbers<[1], [0], [0], [1], [0, 0, 1, 1], [], []>} : vector<24x32xf32>, vector<32x32xf32>, vector<24x32xf32> -> vector<24x32xf32>
    %c0_4 = arith.constant 0 : index
    %c0_5 = arith.constant 0 : index
    %15 = vector.load %arg3[%c0_4, %c0_5] : memref<1x32xf32, #tpu.memory_space<vmem>>, vector<1x32xf32>
    %16 = vector.broadcast %15 : vector<1x32xf32> to vector<24x32xf32>
    %17 = arith.addf %14, %16 : vector<24x32xf32>
    %c0_6 = arith.constant 0 : index
    %c0_7 = arith.constant 0 : index
    %18 = vector.load %arg4[%c0_6, %c0_7] : memref<32x32xf32, #tpu.memory_space<vmem>>, vector<32x32xf32>
    %cst_8 = arith.constant dense<0.000000e+00> : vector<24x32xf32>
    %19 = tpu.matmul %7, %18, %cst_8 {dimension_numbers = #tpu.dot_dimension_numbers<[1], [0], [0], [1], [0, 0, 1, 1], [], []>} : vector<24x32xf32>, vector<32x32xf32>, vector<24x32xf32> -> vector<24x32xf32>
    %c0_9 = arith.constant 0 : index
    %c0_10 = arith.constant 0 : index
    %20 = vector.load %arg5[%c0_9, %c0_10] : memref<1x32xf32, #tpu.memory_space<vmem>>, vector<1x32xf32>
    %21 = vector.broadcast %20 : vector<1x32xf32> to vector<24x32xf32>
    %22 = arith.addf %19, %21 : vector<24x32xf32>
    %c0_11 = arith.constant 0 : index
    %c0_12 = arith.constant 0 : index
    %23 = vector.load %arg6[%c0_11, %c0_12] : memref<32x32xf32, #tpu.memory_space<vmem>>, vector<32x32xf32>
    %cst_13 = arith.constant dense<0.000000e+00> : vector<48x32xf32>
    %24 = tpu.matmul %12, %23, %cst_13 {dimension_numbers = #tpu.dot_dimension_numbers<[1], [0], [0], [1], [0, 0, 1, 1], [], []>} : vector<48x32xf32>, vector<32x32xf32>, vector<48x32xf32> -> vector<48x32xf32>
    %c0_14 = arith.constant 0 : index
    %c0_15 = arith.constant 0 : index
    %25 = vector.load %arg7[%c0_14, %c0_15] : memref<1x32xf32, #tpu.memory_space<vmem>>, vector<1x32xf32>
    %26 = vector.broadcast %25 : vector<1x32xf32> to vector<48x32xf32>
    %27 = arith.addf %24, %26 : vector<48x32xf32>
    %c0_16 = arith.constant 0 : index
    %c0_17 = arith.constant 0 : index
    %28 = vector.load %arg8[%c0_16, %c0_17] : memref<32x32xf32, #tpu.memory_space<vmem>>, vector<32x32xf32>
    %cst_18 = arith.constant dense<0.000000e+00> : vector<48x32xf32>
    %29 = tpu.matmul %12, %28, %cst_18 {dimension_numbers = #tpu.dot_dimension_numbers<[1], [0], [0], [1], [0, 0, 1, 1], [], []>} : vector<48x32xf32>, vector<32x32xf32>, vector<48x32xf32> -> vector<48x32xf32>
    %c0_19 = arith.constant 0 : index
    %c0_20 = arith.constant 0 : index
    %30 = vector.load %arg9[%c0_19, %c0_20] : memref<1x32xf32, #tpu.memory_space<vmem>>, vector<1x32xf32>
    %31 = vector.broadcast %30 : vector<1x32xf32> to vector<48x32xf32>
    %32 = arith.addf %29, %31 : vector<48x32xf32>
    %c0_21 = arith.constant 0 : index
    %c0_22 = arith.constant 0 : index
    %33 = vector.load %arg13[%c0_21, %c0_22] : memref<32x4xf32, #tpu.memory_space<vmem>>, vector<32x4xf32>
    %34 = vector.extract_strided_slice %27 {offsets = [0, 0], sizes = [24, 32], strides = [1, 1]} : vector<48x32xf32> to vector<24x32xf32>
    %35 = arith.mulf %17, %34 : vector<24x32xf32>
    %cst_23 = arith.constant dense<0.000000e+00> : vector<24x4xf32>
    %36 = tpu.matmul %35, %33, %cst_23 {dimension_numbers = #tpu.dot_dimension_numbers<[1], [0], [0], [1], [0, 0, 1, 1], [], []>} : vector<24x32xf32>, vector<32x4xf32>, vector<24x4xf32> -> vector<24x4xf32>
    %cst_24 = arith.constant 0.353553385 : f32
    %37 = vector.broadcast %cst_24 : f32 to vector<24x4xf32>
    %38 = arith.mulf %36, %37 : vector<24x4xf32>
    %39 = vector.extract_strided_slice %27 {offsets = [24, 0], sizes = [24, 32], strides = [1, 1]} : vector<48x32xf32> to vector<24x32xf32>
    %40 = arith.mulf %17, %39 : vector<24x32xf32>
    %cst_25 = arith.constant dense<0.000000e+00> : vector<24x4xf32>
    %41 = tpu.matmul %40, %33, %cst_25 {dimension_numbers = #tpu.dot_dimension_numbers<[1], [0], [0], [1], [0, 0, 1, 1], [], []>} : vector<24x32xf32>, vector<32x4xf32>, vector<24x4xf32> -> vector<24x4xf32>
    %cst_26 = arith.constant 0.353553385 : f32
    %42 = vector.broadcast %cst_26 : f32 to vector<24x4xf32>
    %43 = arith.mulf %41, %42 : vector<24x4xf32>
    %44 = arith.maximumf %38, %43 : vector<24x4xf32>
    %45 = arith.subf %38, %44 : vector<24x4xf32>
    %46 = math.exp %45 : vector<24x4xf32>
    %47 = arith.subf %43, %44 : vector<24x4xf32>
    %48 = math.exp %47 : vector<24x4xf32>
    %49 = arith.addf %46, %48 : vector<24x4xf32>
    %cst_27 = arith.constant 1.000000e+00 : f32
    %50 = vector.broadcast %cst_27 : f32 to vector<24x4xf32>
    %51 = arith.divf %50, %49 : vector<24x4xf32>
    %52 = arith.mulf %46, %51 : vector<24x4xf32>
    %53 = arith.mulf %48, %51 : vector<24x4xf32>
    %54 = tpu.concatenate %52, %53 in 0 : vector<24x4xf32>, vector<24x4xf32> -> vector<48x4xf32>
    %c0_28 = arith.constant 0 : index
    %c0_29 = arith.constant 0 : index
    %55 = vector.load %arg14[%c0_28, %c0_29] : memref<4x32xf32, #tpu.memory_space<vmem>>, vector<4x32xf32>
    %cst_30 = arith.constant dense<0.000000e+00> : vector<48x32xf32>
    %56 = tpu.matmul %54, %55, %cst_30 {dimension_numbers = #tpu.dot_dimension_numbers<[1], [0], [0], [1], [0, 0, 1, 1], [], []>} : vector<48x4xf32>, vector<4x32xf32>, vector<48x32xf32> -> vector<48x32xf32>
    %57 = arith.mulf %56, %32 : vector<48x32xf32>
    %58 = vector.extract_strided_slice %57 {offsets = [0, 0], sizes = [24, 32], strides = [1, 1]} : vector<48x32xf32> to vector<24x32xf32>
    %59 = vector.extract_strided_slice %57 {offsets = [24, 0], sizes = [24, 32], strides = [1, 1]} : vector<48x32xf32> to vector<24x32xf32>
    %60 = arith.addf %58, %59 : vector<24x32xf32>
    %c0_31 = arith.constant 0 : index
    %c0_32 = arith.constant 0 : index
    %61 = vector.load %arg10[%c0_31, %c0_32] : memref<32x35xf32, #tpu.memory_space<vmem>>, vector<32x35xf32>
    %cst_33 = arith.constant dense<0.000000e+00> : vector<24x35xf32>
    %62 = tpu.matmul %22, %61, %cst_33 {dimension_numbers = #tpu.dot_dimension_numbers<[1], [0], [0], [1], [0, 0, 1, 1], [], []>} : vector<24x32xf32>, vector<32x35xf32>, vector<24x35xf32> -> vector<24x35xf32>
    %c0_34 = arith.constant 0 : index
    %c0_35 = arith.constant 0 : index
    %63 = vector.load %arg11[%c0_34, %c0_35] : memref<32x35xf32, #tpu.memory_space<vmem>>, vector<32x35xf32>
    %cst_36 = arith.constant dense<0.000000e+00> : vector<24x35xf32>
    %64 = tpu.matmul %60, %63, %cst_36 {dimension_numbers = #tpu.dot_dimension_numbers<[1], [0], [0], [1], [0, 0, 1, 1], [], []>} : vector<24x32xf32>, vector<32x35xf32>, vector<24x35xf32> -> vector<24x35xf32>
    %65 = arith.addf %62, %64 : vector<24x35xf32>
    %c0_37 = arith.constant 0 : index
    %c0_38 = arith.constant 0 : index
    %66 = vector.load %arg12[%c0_37, %c0_38] : memref<1x35xf32, #tpu.memory_space<vmem>>, vector<1x35xf32>
    %67 = vector.broadcast %66 : vector<1x35xf32> to vector<24x35xf32>
    %68 = arith.addf %65, %67 : vector<24x35xf32>
    %69 = vector.shape_cast %68 : vector<24x35xf32> to vector<3x8x35xf32>
    %c0_39 = arith.constant 0 : index
    %c0_40 = arith.constant 0 : index
    %c0_41 = arith.constant 0 : index
    %70 = vector.load %arg15[%c0_39, %c0_40, %c0_41] : memref<3x8x35xf32, #tpu.memory_space<vmem>>, vector<3x8x35xf32>
    tpu.vector_store %arg15[%c0_39, %c0_40, %c0_41], %69 {strides = array<i32>} : memref<3x8x35xf32, #tpu.memory_space<vmem>>, vector<3x8x35xf32>,
    return
  }
  func.func @transform_0(%arg0: i32) -> (i32, i32, i32) {
    %c0_i32 = arith.constant 0 : i32
    %c0_i32_0 = arith.constant 0 : i32
    %c0_i32_1 = arith.constant 0 : i32
    return %c0_i32, %arg0, %c0_i32_0 : i32, i32, i32
  }
  func.func @transform_1(%arg0: i32) -> (i32, i32) {
    %c0_i32 = arith.constant 0 : i32
    %c0_i32_0 = arith.constant 0 : i32
    %c0_i32_1 = arith.constant 0 : i32
    return %c0_i32, %c0_i32_0 : i32, i32
  }
  func.func @transform_2(%arg0: i32) -> (i32, i32) {
    %c0_i32 = arith.constant 0 : i32
    %c0_i32_0 = arith.constant 0 : i32
    %c0_i32_1 = arith.constant 0 : i32
    return %c0_i32, %c0_i32_0 : i32, i32
  }
  func.func @transform_3(%arg0: i32) -> (i32, i32) {
    %c0_i32 = arith.constant 0 : i32
    %c0_i32_0 = arith.constant 0 : i32
    %c0_i32_1 = arith.constant 0 : i32
    return %c0_i32, %c0_i32_0 : i32, i32
  }
  func.func @transform_4(%arg0: i32) -> (i32, i32) {
    %c0_i32 = arith.constant 0 : i32
    %c0_i32_0 = arith.constant 0 : i32
    %c0_i32_1 = arith.constant 0 : i32
    return %c0_i32, %c0_i32_0 : i32, i32
  }
  func.func @transform_5(%arg0: i32) -> (i32, i32) {
    %c0_i32 = arith.constant 0 : i32
    %c0_i32_0 = arith.constant 0 : i32
    %c0_i32_1 = arith.constant 0 : i32
    return %c0_i32, %c0_i32_0 : i32, i32
  }
  func.func @transform_6(%arg0: i32) -> (i32, i32) {
    %c0_i32 = arith.constant 0 : i32
    %c0_i32_0 = arith.constant 0 : i32
    %c0_i32_1 = arith.constant 0 : i32
    return %c0_i32, %c0_i32_0 : i32, i32
  }
  func.func @transform_7(%arg0: i32) -> (i32, i32) {
    %c0_i32 = arith.constant 0 : i32
    %c0_i32_0 = arith.constant 0 : i32
    %c0_i32_1 = arith.constant 0 : i32
    return %c0_i32, %c0_i32_0 : i32, i32
  }
  func.func @transform_8(%arg0: i32) -> (i32, i32) {
    %c0_i32 = arith.constant 0 : i32
    %c0_i32_0 = arith.constant 0 : i32
    %c0_i32_1 = arith.constant 0 : i32
    return %c0_i32, %c0_i32_0 : i32, i32
  }
  func.func @transform_9(%arg0: i32) -> (i32, i32) {
    %c0_i32 = arith.constant 0 : i32
    %c0_i32_0 = arith.constant 0 : i32
    %c0_i32_1 = arith.constant 0 : i32
    return %c0_i32, %c0_i32_0 : i32, i32
  }
  func.func @transform_10(%arg0: i32) -> (i32, i32) {
    %c0_i32 = arith.constant 0 : i32
    %c0_i32_0 = arith.constant 0 : i32
    %c0_i32_1 = arith.constant 0 : i32
    return %c0_i32, %c0_i32_0 : i32, i32
  }
  func.func @transform_11(%arg0: i32) -> (i32, i32) {
    %c0_i32 = arith.constant 0 : i32
    %c0_i32_0 = arith.constant 0 : i32
    %c0_i32_1 = arith.constant 0 : i32
    return %c0_i32, %c0_i32_0 : i32, i32
  }
  func.func @transform_12(%arg0: i32) -> (i32, i32) {
    %c0_i32 = arith.constant 0 : i32
    %c0_i32_0 = arith.constant 0 : i32
    %c0_i32_1 = arith.constant 0 : i32
    return %c0_i32, %c0_i32_0 : i32, i32
  }
  func.func @transform_13(%arg0: i32) -> (i32, i32) {
    %c0_i32 = arith.constant 0 : i32
    %c0_i32_0 = arith.constant 0 : i32
    %c0_i32_1 = arith.constant 0 : i32
    return %c0_i32, %c0_i32_0 : i32, i32
  }
  func.func @transform_14(%arg0: i32) -> (i32, i32, i32) {
    %c0_i32 = arith.constant 0 : i32
    %c0_i32_0 = arith.constant 0 : i32
    %c0_i32_1 = arith.constant 0 : i32
    return %c0_i32, %arg0, %c0_i32_0 : i32, i32, i32
  }
}

</mosaic_0001>

<bundles_post_ra>
// kernel: multimodal_classifier.1
= control target key start
LH: loop header
LB: loop body
LE: loop exit
PB: predicated region body
PF: predicated region fallthrough
CT: control target
= control target key end

     0   :  { %v1326_v0 = vmov 0.0   ;;  %vm1327_vm0 = vmmov 0   ;;  %vm67_vm1 = vcmask 261120   ;;  %vm728_vm2 = vcmask 1043456   ;;  %s1650_s1 = inlined_call_operand.vmem [shape: f32[32,32], index: 1, kind: input, shape index: {}]   ;;  %s1651_s0 = inlined_call_operand.vmem [shape: f32[3,8,32], index: 0, kind: input, shape index: {}]   ;;  %s1652_s5 = inlined_call_operand.vmem [shape: f32[32,32], index: 5, kind: input, shape index: {}]   ;;  %s1653_s3 = inlined_call_operand.vmem [shape: f32[32,32], index: 3, kind: input, shape index: {}]   ;;  %s1654_s7 = inlined_call_operand.vmem [shape: f32[32,32], index: 7, kind: input, shape index: {}]   ;;  %s1655_s12 = inlined_call_operand.vmem [shape: f32[32,4], index: 12, kind: input, shape index: {}]   ;;  %s1656_s2 = inlined_call_operand.vmem [shape: f32[1,32], index: 2, kind: input, shape index: {}]   ;;  %s1657_s6 = inlined_call_operand.vmem [shape: f32[1,32], index: 6, kind: input, shape index: {}]   ;;  %s1658_s13 = inlined_call_operand.vmem [shape: f32[4,32], index: 13, kind: input, shape index: {}]   ;;  %s1659_s9 = inlined_call_operand.vmem [shape: f32[32,35], index: 9, kind: input, shape index: {}]   ;;  %s1660_s4 = inlined_call_operand.vmem [shape: f32[1,32], index: 4, kind: input, shape index: {}]   ;;  %s1661_s10 = inlined_call_operand.vmem [shape: f32[32,35], index: 10, kind: input, shape index: {}]   ;;  %s1662_s8 = inlined_call_operand.vmem [shape: f32[1,32], index: 8, kind: input, shape index: {}]   ;;  %s1663_s11 = inlined_call_operand.vmem [shape: f32[1,35], index: 11, kind: input, shape index: {}]   ;;  %s1664_s14 = inlined_call_operand.vmem [shape: f32[3,8,35], index: 14, kind: output, shape index: {}]  }
   0x1   :  { %1151 = vmatprep.subr.mxu0 %v1326_v0  ;;  %v59_v1 = vld [vmem:[%s1650_s1 + $0x18] sm:$0xff]  ;;  %v58_v2 = vld [vmem:[%s1650_s1 + $0x10] sm:$0xff]  ;;  %1159 = vmatprep.mubr.msk.f32.mxu0 %vm1327_vm0, %v1326_v0  ;;  %v57_v3 = vld [vmem:[%s1650_s1 + $0x8] sm:$0xff]  ;;  %vm709_vm3 = vcmask 31744   ;;  %vm1032_vm4 = vcmask 285696  }
   0x2   :  { %1152 = vmatpush3.msra.mxu0 %v59_v1  ;;  %1298 = vmatprep.subr.mxu1 %v1326_v0  ;;  %v56_v4 = vld [vmem:[%s1650_s1] sm:$0xff]  ;;  %v251_v6 = vld [vmem:[%s1652_s5 + $0x18] sm:$0xff]  ;;  %v48_v7 = vld [vmem:[%s1651_s0 + $0x8] sm:$0xff] }
   0x3   :  { %1153 = vmatprep.subr.mxu0 %v1326_v0  ;;  %1302 = vmatpush3.msra.mxu1 %v59_v1  ;;  %v47_v5 = vld [vmem:[%s1651_s0] sm:$0xff]  ;;  %v250_v8 = vld [vmem:[%s1652_s5 + $0x10] sm:$0xff]  ;;  %v249_v10 = vld [vmem:[%s1652_s5 + $0x8] sm:$0xff] }
   0x4   :  { %1154 = vmatpush3.msra.mxu0 %v58_v2  ;;  %1299 = vmatprep.subr.mxu1 %v1326_v0  ;;  %v49_v9 = vld [vmem:[%s1651_s0 + $0x10] sm:$0xff]  ;;  %v50_v11 = vsub.f32 %v47_v5, %v48_v7  ;;  %v248_v12 = vld [vmem:[%s1652_s5] sm:$0xff]  ;;  %v160_v15 = vld [vmem:[%s1653_s3 + $0x18] sm:$0xff]  ;;  %v54_v18 = vsub.f32 %v48_v7, %v47_v5 }
   0x5   :  { %1155 = vmatprep.subr.mxu0 %v1326_v0  ;;  %1303 = vmatpush3.msra.mxu1 %v58_v2  ;;  %v51_v13 = vsub.f32 %v48_v7, %v49_v9  ;;  %v52_v14 = vsub.f32 %v49_v9, %v47_v5  ;;  %v159_v16 = vld [vmem:[%s1653_s3 + $0x10] sm:$0xff]  ;;  %v53_v17 = vsub.f32 %v47_v5, %v49_v9  ;;  %v158_v19 = vld [vmem:[%s1653_s3 + $0x8] sm:$0xff]  ;;  %v157_v20 = vld [vmem:[%s1653_s3] sm:$0xff] }
   0x6   :  { %1156 = vmatpush3.msra.mxu0 %v57_v3  ;;  %1300 = vmatprep.subr.mxu1 %v1326_v0  ;;  %v55_v21 = vsub.f32 %v49_v9, %v48_v7  ;;  %v375_v22 = vld [vmem:[%s1654_s7 + $0x18] sm:$0xff]  ;;  %v374_v23 = vld [vmem:[%s1654_s7 + $0x10] sm:$0xff]  ;;  %v373_v24 = vld [vmem:[%s1654_s7 + $0x8] sm:$0xff] }
   0x7   :  { %1157 = vmatprep.subr.mxu0 %v1326_v0  ;;  %1304 = vmatpush3.msra.mxu1 %v57_v3  ;;  %v372_v25 = vld [vmem:[%s1654_s7] sm:$0xff]  ;;  %v481_v26 = vld [vmem:[%s1655_s12 + $0x18] sm:$0xff]  ;;  %v480_v27 = vld [vmem:[%s1655_s12 + $0x10] sm:$0xff] }
   0x8   :  { %1158 = vmatpush3.msra.mxu0 %v56_v4  ;;  %1301 = vmatprep.subr.mxu1 %v1326_v0  ;;  %v479_v28 = vld [vmem:[%s1655_s12 + $0x8] sm:$0xff]  ;;  %v478_v29 = vld [vmem:[%s1655_s12] sm:$0xff] }
   0x9   :  { %1160 = vmatmul.mubr.msk.f32.vlgmr.msra.gmra.mxu0 %vm67_vm1, %v47_v5  ;;  %1185 = vmatprep.subr.mxu0 %v251_v6  ;;  %v1040_v35 = vld [vmem:[%s1656_s2] ss:$0 sm:$0xff] }
   0xa   :  { %1186 = vmatpush3.msra.mxu0 %v251_v6  ;;  %1162 = vmatprep.mubr.msk.f32.mxu0 %vm1327_vm0, %v1326_v0  ;;  %v1048_v38 = vld [vmem:[%s1657_s6] ss:$0 sm:$0xff] }
   0xb   :  { %1187 = vmatprep.subr.mxu0 %v250_v8  ;;  %1305 = vmatpush3.msra.mxu1 %v56_v4  ;;  %v708_v2 = vld [vmem:[%s1658_s13] sm:$0xf] }
   0xc   :  { %1188 = vmatpush3.msra.mxu0 %v250_v8  ;;  %1165 = vmatprep.mubr.msk.f32.mxu1 %vm1327_vm0, %v1326_v0 }
   0xd   :  { %1163 = vmatmul.mubr.msk.f32.gmra.mxu0 %vm67_vm1, %v48_v7  ;;  %1189 = vmatprep.subr.mxu0 %v249_v10 }
   0xe   :  { %1190 = vmatpush3.msra.mxu0 %v249_v10  ;;  %1193 = vmatprep.mubr.msk.f32.mxu0 %vm67_vm1, %v50_v11 }
   0xf   :  { %1191 = vmatprep.subr.mxu0 %v248_v12  ;;  %1166 = vmatmul.mubr.msk.f32.vlgmr.msra.gmra.mxu1 %vm67_vm1, %v49_v9 }
  0x10   :  { %1192 = vmatpush3.msra.mxu0 %v248_v12  ;;  %1168 = vmatprep.subr.mxu1 %v1326_v0 }
  0x11   :  { %1194 = vmatmul.mubr.msk.f32.vlgmr.msra.gmra.mxu0 %vm67_vm1, %v51_v13  ;;  %1169 = vmatpush3.msra.mxu1 %v160_v15 }
  0x12   :  { %1196 = vmatprep.mubr.msk.f32.mxu0 %vm67_vm1, %v52_v14  ;;  %1170 = vmatprep.subr.mxu1 %v1326_v0 }
  0x13   :  { %1171 = vmatpush3.msra.mxu1 %v159_v16  ;;  %1176 = vmatprep.mubr.msk.f32.mxu1 %vm1327_vm0, %v1326_v0 }
  0x14   :  { %1172 = vmatprep.subr.mxu1 %v1326_v0  ;;  %1219 = vmatprep.subr.mxu0 %v1326_v0 }
  0x15   :  { %1197 = vmatmul.mubr.msk.f32.gmra.mxu0 %vm67_vm1, %v53_v17  ;;  %1173 = vmatpush3.msra.mxu1 %v158_v19 }
  0x16   :  { %1199 = vmatprep.mubr.msk.f32.mxu0 %vm67_vm1, %v54_v18  ;;  %1174 = vmatprep.subr.mxu1 %v1326_v0 }
  0x17   :  { %1175 = vmatpush3.msra.mxu1 %v157_v20  ;;  %1220 = vmatpush3.msra.mxu0 %v481_v26 }
  0x18   :  { %1177 = vmatmul.mubr.msk.f32.vlgmr.msra.gmra.mxu1 %vm67_vm1, %v47_v5  ;;  %1202 = vmatprep.subr.mxu1 %v375_v22 }
  0x19   :  { %1200 = vmatmul.mubr.msk.f32.gmra.mxu0 %vm67_vm1, %v55_v21  ;;  %1179 = vmatprep.mubr.msk.f32.mxu1 %vm1327_vm0, %v1326_v0 }
  0x1a   :  { %1203 = vmatpush3.msra.mxu1 %v375_v22  ;;  %1227 = vmatprep.mubr.msk.f32.mxu0 %vm1327_vm0, %v1326_v0 }
  0x1b   :  { %1204 = vmatprep.subr.mxu1 %v374_v23  ;;  %1221 = vmatprep.subr.mxu0 %v1326_v0 }
  0x1c   :  { %1180 = vmatmul.mubr.msk.f32.gmra.mxu1 %vm67_vm1, %v48_v7  ;;  %1222 = vmatpush3.msra.mxu0 %v480_v27 }
  0x1d   :  { %1205 = vmatpush3.msra.mxu1 %v374_v23  ;;  %1182 = vmatprep.mubr.msk.f32.mxu1 %vm1327_vm0, %v1326_v0 }
  0x1e   :  { %1206 = vmatprep.subr.mxu1 %v373_v24  ;;  %1223 = vmatprep.subr.mxu0 %v1326_v0 }
  0x1f   :  { %1207 = vmatpush3.msra.mxu1 %v373_v24  ;;  %1224 = vmatpush3.msra.mxu0 %v479_v28 }
  0x20   :  { %1183 = vmatmul.mubr.msk.f32.gmra.mxu1 %vm67_vm1, %v49_v9  ;;  %1208 = vmatprep.subr.mxu1 %v372_v25 }
  0x21   :  { %1210 = vmatprep.mubr.msk.f32.mxu1 %vm67_vm1, %v50_v11  ;;  %1209 = vmatpush3.msra.mxu1 %v372_v25 }
  0x22   :  { %1236 = vmatprep.subr.mxu1 %v1326_v0  ;;  %1225 = vmatprep.subr.mxu0 %v1326_v0 }
  0x23   :  { %1226 = vmatpush3.msra.mxu0 %v478_v29 }
  0x24   :  { %1211 = vmatmul.mubr.msk.f32.vlgmr.msra.gmra.mxu1 %vm67_vm1, %v51_v13  ;;  %1253 = vmatprep.subr.msk.mxu0 %vm728_vm2, %v708_v2 }
  0x25   :  { %1213 = vmatprep.mubr.msk.f32.mxu1 %vm67_vm1, %v52_v14  ;;  %1237 = vmatpush3.msra.mxu1 %v481_v26 }
  0x26   :  { %1238 = vmatprep.subr.mxu1 %v1326_v0 }
  0x27   :  { %1239 = vmatpush3.msra.mxu1 %v480_v27 }
  0x28   :  { %1214 = vmatmul.mubr.msk.f32.gmra.mxu1 %vm67_vm1, %v53_v17  ;;  %1240 = vmatprep.subr.mxu1 %v1326_v0 }
  0x29   :  { %1216 = vmatprep.mubr.msk.f32.mxu1 %vm67_vm1, %v54_v18  ;;  %1241 = vmatpush3.msra.mxu1 %v479_v28 }
  0x2a   :  { %1242 = vmatprep.subr.mxu1 %v1326_v0 }
  0x2b   :  { %1243 = vmatpush3.msra.mxu1 %v478_v29 }
  0x2c   :  { %1217 = vmatmul.mubr.msk.f32.gmra.mxu1 %vm67_vm1, %v55_v21  ;;  %1264 = vmatprep.subr.mxu1 %v1326_v0 }
  0x2d   :  { %1244 = vmatprep.mubr.msk.f32.mxu1 %vm1327_vm0, %v1326_v0 }
  0xc9   :  { %v143_v30 = vpop.f32.mrf.mxu0 }
  0xca   :  { %v144_v40 = vadd.f32 %v1040_v35, %v143_v30 }
  0xcb   :  { %v1161_v31 = vpop.f32.mrf.mxu0 }
  0xcd   :  { %v148_v32 = vpop.f32.mrf.mxu0 }
  0xce   :  { %v149_v47 = vadd.f32 %v1040_v35, %v148_v32 }
  0xcf   :  { %v1164_v33 = vpop.f32.mrf.mxu0  ;;  %v153_v34 = vpop.f32.mrf.mxu1 }
  0xd0   :  { %v154_v52 = vadd.f32 %v1040_v35, %v153_v34 }
  0xd1   :  { %v1195_v36 = vpop.f32.mrf.mxu0  ;;  %v1167_v37 = vpop.f32.mrf.mxu1 }
  0xd2   :  { %v349_v43 = vadd.f32 %v1195_v36, %v1048_v38 }
  0xd3   :  { %v343_v39 = vpop.f32.mrf.mxu0 }
  0xd4   :  { %v344_v41 = vadd.f32 %v1048_v38, %v343_v39  ;;  %v483_v51 = vmul.f32 %v349_v43, %v149_v47 }
  0xd5   :  { %v1198_v42 = vpop.f32.mrf.mxu0 }
  0xd6   :  { %v482_v44 = vmul.f32 %v344_v41, %v144_v40  ;;  %v359_v45 = vadd.f32 %v1198_v42, %v1048_v38 }
  0xd7   :  { %v353_v46 = vpop.f32.mrf.mxu0 }
  0xd8   :  { %v577_v48 = vmul.f32 %v359_v45, %v144_v40  ;;  %1228 = vmatmul.mubr.msk.f32.vlgmr.msra.gmra.mxu0 %vm67_vm1, %v482_v44  ;;  %v1534_v49 = vpop.f32.mrf.mxu1  ;;  %v354_v53 = vadd.f32 %v1048_v38, %v353_v46 }
  0xd9   :  { %v1201_v50 = vpop.f32.mrf.mxu0  ;;  %1230 = vmatprep.mubr.msk.f32.mxu0 %vm1327_vm0, %v1326_v0  ;;  %1254 = vmatpush3.msk.msra.mxu0 %vm728_vm2, %v708_v2  ;;  %v836_v2 = vld [vmem:[%s1659_s9] sm:$0xff] }
  0xda   :  { %1245 = vmatmul.mubr.msk.f32.vlgmr.msra.gmra.mxu1 %vm67_vm1, %v577_v48  ;;  %v1178_v54 = vpop.f32.mrf.mxu1  ;;  %v484_v58 = vmul.f32 %v354_v53, %v154_v52  ;;  %v369_v59 = vadd.f32 %v1201_v50, %v1048_v38  ;;  %1281 = vmatprep.subr.mxu0 %v1326_v0 }
  0xdb   :  { %v363_v55 = vpop.f32.mrf.mxu0  ;;  %1247 = vmatprep.mubr.msk.f32.mxu1 %vm1327_vm0, %v1326_v0 }
  0xdc   :  { %v364_v56 = vadd.f32 %v1048_v38, %v363_v55  ;;  %1231 = vmatmul.mubr.msk.f32.gmra.mxu0 %vm67_vm1, %v483_v51  ;;  %v1542_v57 = vpop.f32.mrf.mxu1  ;;  %v579_v63 = vmul.f32 %v369_v59, %v154_v52  ;;  %v838_v59 = vld [vmem:[%s1659_s9 + $0x10] sm:$0xff] }
  0xdd   :  { %1233 = vmatprep.mubr.msk.f32.mxu0 %vm1327_vm0, %v1326_v0 }
  0xde   :  { %v578_v60 = vmul.f32 %v364_v56, %v149_v47  ;;  %v1181_v61 = vpop.f32.mrf.mxu1  ;;  %v839_v56 = vld [vmem:[%s1659_s9 + $0x18] sm:$0xff] }
  0xe0   :  { %1234 = vmatmul.mubr.msk.f32.gmra.mxu0 %vm67_vm1, %v484_v58  ;;  %1248 = vmatmul.mubr.msk.f32.gmra.mxu1 %vm67_vm1, %v578_v60  ;;  %v1548_v62 = vpop.f32.mrf.mxu1 }
  0xe1   :  { %1250 = vmatprep.mubr.msk.f32.mxu1 %vm1327_vm0, %v1326_v0 }
  0xe2   :  { %v1184_v1 = vpop.f32.mrf.mxu1 }
  0xe4   :  { %1251 = vmatmul.mubr.msk.f32.gmra.mxu1 %vm67_vm1, %v579_v63  ;;  %v1559_v3 = vpop.f32.mrf.mxu1  ;;  %v837_v63 = vld [vmem:[%s1659_s9 + $0x8] sm:$0xff] }
  0xe5   :  { %1272 = vmatprep.mubr.msk.f32.mxu1 %vm1327_vm0, %v1326_v0 }
  0xe6   :  { %v1561_v4 = vpop.f32.mrf.mxu1 }
  0xe8   :  { %v1563_v5 = vpop.f32.mrf.mxu1 }
  0xea   :  { %v1565_v6 = vpop.f32.mrf.mxu1 }
  0xec   :  { %v1567_v7 = vpop.f32.mrf.mxu1 }
  0xee   :  { %v1569_v8 = vpop.f32.mrf.mxu1 }
 0x198   :  { %v560_v9 = vpop.f32.mrf.mxu0 }
 0x199   :  { %v574_v12 = vmul.f32 0.35355338, %v560_v9 }
 0x19a   :  { %v1229_v10 = vpop.f32.mrf.mxu0  ;;  %v655_v11 = vpop.f32.mrf.mxu1 }
 0x19b   :  { %v669_v13 = vmul.f32 0.35355338, %v655_v11  ;;  %v1044_v10 = vld [vmem:[%s1660_s4] ss:$0 sm:$0xff] }
 0x19c   :  { %v565_v14 = vpop.f32.mrf.mxu0  ;;  %v1246_v15 = vpop.f32.mrf.mxu1  ;;  %v235_v11 = vadd.f32 %v1044_v10, %v1534_v49  ;;  %v843_v49 = vld [vmem:[%s1661_s10 + $0x18] sm:$0xff] }
 0x19d   :  { %v672_v16 = vmax.f32 %v574_v12, %v669_v13  ;;  %v575_v24 = vmul.f32 0.35355338, %v565_v14  ;;  %1265 = vmatpush3.msra.mxu1 %v843_v49  ;;  %v842_v14 = vld [vmem:[%s1661_s10 + $0x10] sm:$0xff]  ;;  %v1055_v15 = vld [vmem:[%s1662_s8] ss:$0 sm:$0xff] }
 0x19e   :  { %v1232_v17 = vpop.f32.mrf.mxu0  ;;  %1266 = vmatprep.subr.mxu1 %v1326_v0 }
 0x19f   :  { %v675_v18 = vsub.f32 %v574_v12, %v672_v16  ;;  %v684_v19 = vsub.f32 %v669_v13, %v672_v16  ;;  %v240_v12 = vadd.f32 %v1044_v10, %v1542_v57  ;;  %v245_v13 = vadd.f32 %v1044_v10, %v1548_v62  ;;  %1267 = vmatpush3.msra.mxu1 %v842_v14  ;;  %v841_v57 = vld [vmem:[%s1661_s10 + $0x8] sm:$0xff]  ;;  %v840_v62 = vld [vmem:[%s1661_s10] sm:$0xff] }
 0x1a0   :  { %v570_v20 = vpop.f32.mrf.mxu0  ;;  %v660_v21 = vpop.f32.mrf.mxu1  ;;  %1268 = vmatprep.subr.mxu1 %v1326_v0 }
 0x1a1   :  { %v678_v22 = vmul.f32 1.442695, %v675_v18  ;;  %v687_v23 = vmul.f32 1.442695, %v684_v19  ;;  %v670_v25 = vmul.f32 0.35355338, %v660_v21  ;;  %1269 = vmatpush3.msra.mxu1 %v841_v57  ;;  %v450_v18 = vadd.f32 %v1055_v15, %v1561_v4 }
 0x1a2   :  { %v1235_v26 = vpop.f32.mrf.mxu0  ;;  %v1249_v27 = vpop.f32.mrf.mxu1  ;;  %v576_v30 = vmul.f32 0.35355338, %v570_v20  ;;  %1270 = vmatprep.subr.mxu1 %v1326_v0  ;;  %v465_v19 = vadd.f32 %v1563_v5, %v1055_v15 }
 0x1a3   :  { %1308 = vpow2.f32 %v678_v22  ;;  %v673_v28 = vmax.f32 %v575_v24, %v670_v25  ;;  %1271 = vmatpush3.msra.mxu1 %v840_v62 }
 0x1a4   :  { %1310 = vpow2.f32 %v687_v23  ;;  %v665_v29 = vpop.f32.mrf.mxu1 }
 0x1a5   :  { %v671_v31 = vmul.f32 0.35355338, %v665_v29  ;;  %v676_v32 = vsub.f32 %v575_v24, %v673_v28  ;;  %v685_v33 = vsub.f32 %v670_v25, %v673_v28  ;;  %v460_v24 = vadd.f32 %v1055_v15, %v1565_v6 }
 0x1a6   :  { %v1252_v34 = vpop.f32.mrf.mxu1  ;;  %v475_v25 = vadd.f32 %v1567_v7, %v1055_v15  ;;  %v455_v28 = vadd.f32 %v1559_v3, %v1055_v15  ;;  %v470_v29 = vadd.f32 %v1055_v15, %v1569_v8 }
 0x1a7   :  { %v674_v35 = vmax.f32 %v576_v30, %v671_v31  ;;  %v680_v36 = vmul.f32 1.442695, %v676_v32  ;;  %v689_v37 = vmul.f32 1.442695, %v685_v33 }
 0x1a9   :  { %v677_v38 = vsub.f32 %v576_v30, %v674_v35  ;;  %v686_v39 = vsub.f32 %v671_v31, %v674_v35  ;;  %1312 = vpow2.f32 %v680_v36 }
 0x1aa   :  { %1314 = vpow2.f32 %v689_v37 }
 0x1ab   :  { %v682_v40 = vmul.f32 1.442695, %v677_v38  ;;  %v691_v41 = vmul.f32 1.442695, %v686_v39  ;;  %v1081_v38 = vld [vmem:[%s1663_s11] ss:$0 sm:$0xff] }
 0x1ad   :  { %1316 = vpow2.f32 %v682_v40 }
 0x1ae   :  { %1318 = vpow2.f32 %v691_v41 }
 0x1b0   :  { %v1309_v42 = vpop.eup %1308 }
 0x1b1   :  { %v1311_v43 = vpop.eup %1310 }
 0x1b2   :  { %v693_v44 = vadd.f32 %v1311_v43, %v1309_v42 }
 0x1b4   :  { %1320 = vrcp.f32 %v693_v44 }
 0x1b6   :  { %v1313_v45 = vpop.eup %1312 }
 0x1b7   :  { %v1315_v46 = vpop.eup %1314 }
 0x1b8   :  { %v694_v47 = vadd.f32 %v1315_v46, %v1313_v45 }
 0x1ba   :  { %v1317_v48 = vpop.eup %1316  ;;  %1322 = vrcp.f32 %v694_v47 }
 0x1bb   :  { %v1319_v50 = vpop.eup %1318 }
 0x1bc   :  { %v695_v51 = vadd.f32 %v1319_v50, %v1317_v48 }
 0x1be   :  { %1324 = vrcp.f32 %v695_v51 }
 0x1c1   :  { %v1321_v52 = vpop.eup %1320 }
 0x1c2   :  { %v702_v53 = vmul.f32 %v1321_v52, %v1309_v42  ;;  %v705_v61 = vmul.f32 %v1321_v52, %v1311_v43 }
 0x1c4   :  { %1255 = vmatprep.mubr.msk.f32.mxu0 %vm709_vm3, %v702_v53 }
 0x1c7   :  { %v1323_v54 = vpop.eup %1322 }
 0x1c8   :  { %v703_v55 = vmul.f32 %v1323_v54, %v1313_v45  ;;  %v706_v1 = vmul.f32 %v1323_v54, %v1315_v46 }
 0x1ca   :  { %1256 = vmatmul.mubr.msk.f32.vlgmr.msra.gmra.mxu0 %vm709_vm3, %v703_v55 }
 0x1cb   :  { %v1325_v58 = vpop.eup %1324  ;;  %1282 = vmatpush3.msra.mxu0 %v839_v56 }
 0x1cc   :  { %v704_v60 = vmul.f32 %v1325_v58, %v1317_v48  ;;  %1283 = vmatprep.subr.mxu0 %v1326_v0  ;;  %v707_v9 = vmul.f32 %v1325_v58, %v1319_v50 }
 0x1cd   :  { %1284 = vmatpush3.msra.mxu0 %v838_v59 }
 0x1ce   :  { %1258 = vmatprep.mubr.msk.f32.mxu0 %vm709_vm3, %v704_v60  ;;  %1285 = vmatprep.subr.mxu0 %v1326_v0 }
 0x1cf   :  { %1259 = vmatmul.mubr.msk.f32.gmra.mxu0 %vm709_vm3, %v705_v61 }
 0x1d0   :  { %1261 = vmatprep.mubr.msk.f32.mxu0 %vm709_vm3, %v706_v1  ;;  %1286 = vmatpush3.msra.mxu0 %v837_v63 }
 0x1d1   :  { %1287 = vmatprep.subr.mxu0 %v1326_v0 }
 0x1d2   :  { %1288 = vmatpush3.msra.mxu0 %v836_v2 }
 0x1d3   :  { %1262 = vmatmul.mubr.msk.f32.gmra.mxu0 %vm709_vm3, %v707_v9 }
 0x1d4   :  { %1289 = vmatprep.mubr.msk.f32.mxu0 %vm1327_vm0, %v1326_v0 }
 0x1d7   :  { %1290 = vmatmul.mubr.msk.f32.vlgmr.msra.gmra.mxu0 %vm67_vm1, %v235_v11 }
 0x1d8   :  { %1292 = vmatprep.mubr.msk.f32.mxu0 %vm1327_vm0, %v1326_v0 }
 0x1db   :  { %1293 = vmatmul.mubr.msk.f32.gmra.mxu0 %vm67_vm1, %v240_v12 }
 0x1dc   :  { %1295 = vmatprep.mubr.msk.f32.mxu0 %vm1327_vm0, %v1326_v0 }
 0x1df   :  { %1296 = vmatmul.mubr.msk.f32.gmra.mxu0 %vm67_vm1, %v245_v13 }
 0x28a   :  { %v1257_v16 = vpop.f32.mrf.mxu0 }
 0x28b   :  { %v828_v5 = vmul.f32 %v1257_v16, %v455_v28 }
 0x28c   :  { %v798_v17 = vpop.f32.mrf.mxu0 }
 0x28d   :  { %v827_v21 = vmul.f32 %v798_v17, %v450_v18 }
 0x28f   :  { %v1260_v20 = vpop.f32.mrf.mxu0 }
 0x290   :  { %v830_v22 = vmul.f32 %v1260_v20, %v465_v19 }
 0x291   :  { %v808_v23 = vpop.f32.mrf.mxu0 }
 0x292   :  { %v833_v26 = vadd.f32 %v830_v22, %v827_v21  ;;  %v829_v30 = vmul.f32 %v808_v23, %v460_v24 }
 0x293   :  { %v1263_v27 = vpop.f32.mrf.mxu0 }
 0x294   :  { %v832_v31 = vmul.f32 %v1263_v27, %v475_v25  ;;  %1273 = vmatmul.mubr.msk.f32.vlgmr.msra.gmra.mxu1 %vm67_vm1, %v833_v26 }
 0x295   :  { %v818_v4 = vpop.f32.mrf.mxu0  ;;  %1275 = vmatprep.mubr.msk.f32.mxu1 %vm1327_vm0, %v1326_v0 }
 0x296   :  { %v835_v32 = vadd.f32 %v832_v31, %v829_v30  ;;  %v831_v33 = vmul.f32 %v818_v4, %v470_v29 }
 0x297   :  { %v1008_v6 = vpop.f32.mrf.mxu0 }
 0x298   :  { %v834_v34 = vadd.f32 %v831_v33, %v828_v5 }
 0x299   :  { %v1291_v7 = vpop.f32.mrf.mxu0 }
 0x29a   :  { %1276 = vmatmul.mubr.msk.f32.gmra.mxu1 %vm67_vm1, %v834_v34 }
 0x29b   :  { %v1013_v35 = vpop.f32.mrf.mxu0  ;;  %1278 = vmatprep.mubr.msk.f32.mxu1 %vm1327_vm0, %v1326_v0 }
 0x29d   :  { %v1294_v3 = vpop.f32.mrf.mxu0 }
 0x29e   :  { %1279 = vmatmul.mubr.msk.f32.gmra.mxu1 %vm67_vm1, %v835_v32 }
 0x29f   :  { %v1018_v8 = vpop.f32.mrf.mxu0 }
 0x2a1   :  { %v1297_v36 = vpop.f32.mrf.mxu0 }
 0x354   :  { %v919_v37 = vpop.f32.mrf.mxu1 }
 0x355   :  { %v1009_v39 = vadd.f32 %v1008_v6, %v919_v37 }
 0x356   :  { %v1274_v40 = vpop.f32.mrf.mxu1 }
 0x357   :  { %v1029_v41 = vadd.f32 %v1081_v38, %v1009_v39 }
 0x359   :  { %1033 = vst.msk [vmem:[%s1664_s14] sm:$0xff] %vm1032_vm4, %v1029_v41 }
 0x35a   :  { %v924_v42 = vpop.f32.mrf.mxu1 }
 0x35b   :  { %v1014_v0 = vadd.f32 %v1013_v35, %v924_v42 }
 0x35c   :  { %v1277_v43 = vpop.f32.mrf.mxu1 }
 0x35d   :  { %v1030_v44 = vadd.f32 %v1081_v38, %v1014_v0 }
 0x35e   :  { %v929_v45 = vpop.f32.mrf.mxu1 }
 0x35f   :  { %1034 = vst.msk [vmem:[%s1664_s14 + $0x8] sm:$0xff] %vm1032_vm4, %v1030_v44  ;;  %v1019_v46 = vadd.f32 %v1018_v8, %v929_v45 }
 0x360   :  { %v1280_v47 = vpop.f32.mrf.mxu1 }
 0x361   :  { %v1031_v48 = vadd.f32 %v1081_v38, %v1019_v46 }
 0x363   :  { %1035 = vst.msk [vmem:[%s1664_s14 + $0x10] sm:$0xff] %vm1032_vm4, %v1031_v48 }

</bundles_post_ra>
